<compile_context>
chip_gen: v7x
topology: tpu7x:2x2x1
jax: 0.10.0
libtpu: 0.0.40
codegen_flags: <defaults>
</compile_context>

<pallas_src>
import functools

import jax
import jax.numpy as jnp
import numpy as np
from jax.experimental import pallas as pl
from jax.experimental.pallas import tpu as pltpu


BN_EPS = 1e-5
BN_SCALE = 1.0 / float(np.sqrt(1.0 + BN_EPS))   # gamma=1, beta=0, mean=0, var=1


def _round_up(x, m):
    return ((x + m - 1) // m) * m


# ---------------------------------------------------------------------------
# Pallas kernel: matmul with fused shift + activation (single full-K block)
# ---------------------------------------------------------------------------
def _matmul_fused_kernel(a_ref, b_ref, shift_ref, o_ref, *, act):
    y = jnp.dot(a_ref[...], b_ref[...], preferred_element_type=jnp.float32)
    y = y + shift_ref[...]
    if act == "relu":
        y = jnp.maximum(y, 0.0)
    elif act == "sigmoid":
        y = jax.nn.sigmoid(y)
    o_ref[...] = y.astype(o_ref.dtype)


def pallas_matmul_fused(a, b, shift, act):
    """act(a @ b + shift).

    a     : (M, K)  float  (cast to bf16; M padded only to 8 sublanes)
    b     : (K, Np) bf16 weights, Np % 128 == 0, BN scale already folded in
    shift : (1, Np) f32
    returns (M, Np) f32
    """
    M, K = a.shape
    Np = b.shape[1]

    # M lives on the sublane axis -> pad to 8, not 128.  Cap the block at 256
    # rows so the bigger layers still expose >=2 parallel blocks (v7x megacore).
    tm_cap = 256
    Mp = _round_up(M, 8)
    if Mp <= tm_cap:
        tm = Mp
    else:
        tm = tm_cap
        Mp = _round_up(M, tm)

    tn = min(Np, 512)
    if Np % tn != 0:
        tn = 128

    a_bf = a.astype(jnp.bfloat16)
    if Mp != M:
        a_bf = jnp.pad(a_bf, ((0, Mp - M), (0, 0)))

    out = pl.pallas_call(
        functools.partial(_matmul_fused_kernel, act=act),
        out_shape=jax.ShapeDtypeStruct((Mp, Np), jnp.float32),
        grid_spec=pltpu.PrefetchScalarGridSpec(
            num_scalar_prefetch=0,
            grid=(Mp // tm, Np // tn),
            in_specs=[
                pl.BlockSpec((tm, K), lambda i, j: (i, 0)),   # full-K block
                pl.BlockSpec((K, tn), lambda i, j: (0, j)),   # full-K block
                pl.BlockSpec((1, tn), lambda i, j: (0, j)),
            ],
            out_specs=pl.BlockSpec((tm, tn), lambda i, j: (i, j)),
        ),
        compiler_params=pltpu.CompilerParams(
            dimension_semantics=("parallel", "parallel")),
    )(a_bf, b, shift)
    return out[:M]


# ---------------------------------------------------------------------------
# im2col (channels-last) + layer wrappers
# ---------------------------------------------------------------------------
def _im2col3d_ndhwc(x, k, stride, pad):
    """x: (N, D, H, W, C) -> patches (N*Do*Ho*Wo, k^3*C), tap-major / chan-minor."""
    if pad:
        x = jnp.pad(x, ((0, 0), (pad, pad), (pad, pad), (pad, pad), (0, 0)))
    N, D, H, W, C = x.shape
    Do = (D - k) // stride + 1
    Ho = (H - k) // stride + 1
    Wo = (W - k) // stride + 1
    cols = []
    for kd in range(k):
        for kh in range(k):
            for kw in range(k):
                cols.append(x[:, kd:kd + stride * Do:stride,
                              kh:kh + stride * Ho:stride,
                              kw:kw + stride * Wo:stride, :])
    p = jnp.stack(cols, axis=4)                         # (N,Do,Ho,Wo,k^3,C)
    p = p.reshape(N * Do * Ho * Wo, k ** 3 * C)
    return p, (N, Do, Ho, Wo)


def conv3d_layer(x, layer):
    """Regular Conv3d(+BN+act) in NDHWC using the fused Pallas matmul."""
    patches, (N, Do, Ho, Wo) = _im2col3d_ndhwc(
        x.astype(jnp.bfloat16), layer["k"], layer["stride"], layer["pad"])
    out = pallas_matmul_fused(patches, layer["wmat"], layer["shift"], layer["act"])
    cout = layer["cout"]
    return out[:, :cout].reshape(N, Do, Ho, Wo, cout)


def deconv_subpixel_layer(x, layer):
    """ConvTranspose3d(k=4, stride=2, padding=1)(+BN+act) via sub-pixel decomposition.

    Output parity (pd,ph,pw) at position 2m+parity reads the 2-wide window of
    the 1-padded input starting at m+parity; window offset u in {0,1} uses the
    transposed-conv tap t = 3 - 2*u - parity.  All 8 parity groups are fused
    into a single matmul with 8*Cout output columns and interleaved afterwards.
    """
    N, D, H, W, _ = x.shape
    cout = layer["cout"]
    patches, _ = _im2col3d_ndhwc(x.astype(jnp.bfloat16), k=2, stride=1, pad=1)
    out = pallas_matmul_fused(patches, layer["wmat"], layer["shift"], layer["act"])
    r = out[:, :8 * cout].reshape(N, D + 1, H + 1, W + 1, 2, 2, 2, cout)
    # out[n, 2d+pd, 2h+ph, 2w+pw, c] = r[n, d+pd, h+ph, w+pw, pd, ph, pw, c]
    slabs = [[[r[:, pd:pd + D, ph:ph + H, pw:pw + W, pd, ph, pw, :]
               for pw in (0, 1)] for ph in (0, 1)] for pd in (0, 1)]
    s = jnp.stack([jnp.stack([jnp.stack(inner, 0) for inner in mid], 0)
                   for mid in slabs], 0)                # (pd,ph,pw,N,D,H,W,C)
    return s.transpose(3, 4, 0, 5, 1, 6, 2, 7).reshape(N, 2 * D, 2 * H, 2 * W, cout)


# ---------------------------------------------------------------------------
# Weight preparation (all done once at init)
# ---------------------------------------------------------------------------
def _pad_cols(wmat, shift):
    """Pad output columns to a multiple of 128 lanes; cast weights to bf16."""
    n = wmat.shape[1]
    npad = _round_up(n, 128)
    if npad != n:
        wmat = jnp.pad(wmat, ((0, 0), (0, npad - n)))
        shift = jnp.pad(shift, (0, npad - n))
    return wmat.astype(jnp.bfloat16), shift.astype(jnp.float32).reshape(1, npad)


def make_conv_layer(w, b, stride, pad, act, bn_scale):
    """Conv3d layer.  w: (Cout, Cin, k, k, k) PyTorch layout."""
    cout, cin, k, _, _ = w.shape
    # rows ordered (kd, kh, kw, cin) to match _im2col3d_ndhwc column order
    wmat = w.transpose(2, 3, 4, 1, 0).reshape(k ** 3 * cin, cout) * bn_scale
    shift = b * bn_scale
    wmat, shift = _pad_cols(wmat, shift)
    return dict(kind="conv", wmat=wmat, shift=shift, k=k, stride=stride,
                pad=pad, act=act, cout=cout)


def make_deconv_s1_layer(w_t, b, pad, act, bn_scale):
    """ConvTranspose3d, stride=1: equivalent conv with flipped kernel, pad k-1-p."""
    cin, cout, k, _, _ = w_t.shape
    w_conv = jnp.flip(w_t, axis=(2, 3, 4)).transpose(1, 0, 2, 3, 4)  # (Cout,Cin,k,k,k)
    return make_conv_layer(w_conv, b, stride=1, pad=k - 1 - pad, act=act,
                           bn_scale=bn_scale)


def make_deconv_subpixel_layer(w_t, b, act, bn_scale):
    """ConvTranspose3d(k=4, stride=2, padding=1) -> 8 parity sub-kernels (2x2x2 taps)."""
    cin, cout, k, _, _ = w_t.shape
    assert k == 4
    sub = []
    for pd in (0, 1):
        for ph in (0, 1):
            for pw in (0, 1):
                wk = w_t[:, :, [3 - pd, 1 - pd], :, :]      # tap t = 3 - 2u - parity
                wk = wk[:, :, :, [3 - ph, 1 - ph], :]
                wk = wk[:, :, :, :, [3 - pw, 1 - pw]]       # (Cin,Cout,2,2,2) by (u_d,u_h,u_w)
                wk = wk.transpose(2, 3, 4, 0, 1).reshape(8 * cin, cout)
                sub.append(wk)
    wmat = jnp.concatenate(sub, axis=1) * bn_scale          # (8*Cin, 8*Cout)
    shift = jnp.tile(b * bn_scale, 8)
    wmat, shift = _pad_cols(wmat, shift)
    return dict(kind="deconv2x", wmat=wmat, shift=shift, act=act, cout=cout)


# ---------------------------------------------------------------------------
# Parameter init (deterministic) + SimpleVAE forward
# ---------------------------------------------------------------------------
def _init_conv(key, cout, cin, k, std=0.05):
    kw, kb = jax.random.split(key)
    w = jax.random.normal(kw, (cout, cin, k, k, k), jnp.float32) * std
    b = jax.random.normal(kb, (cout,), jnp.float32) * std
    return w, b


def _init_deconv(key, cin, cout, k, std=0.05):
    kw, kb = jax.random.split(key)
    w = jax.random.normal(kw, (cin, cout, k, k, k), jnp.float32) * std
    b = jax.random.normal(kb, (cout,), jnp.float32) * std
    return w, b


def init_params(key, in_channels=1, out_channels=1, latent_channels=16):
    keys = jax.random.split(key, 10)
    params = {"latent_channels": latent_channels}

    enc = []
    enc_dims = [(in_channels, 32), (32, 64), (64, 128), (128, 256)]
    for i, (ci, co) in enumerate(enc_dims):          # conv_block: Conv+BN+ReLU(+Dropout)
        w, b = _init_conv(keys[i], co, ci, 3)
        enc.append(make_conv_layer(w, b, stride=2, pad=1, act="relu", bn_scale=BN_SCALE))
    w, b = _init_conv(keys[4], latent_channels * 2, 256, 3)     # final Conv3d
    enc.append(make_conv_layer(w, b, stride=1, pad=1, act="none", bn_scale=1.0))
    params["encoder"] = enc

    dec = []
    w, b = _init_deconv(keys[5], latent_channels, 256, 3)       # ConvT s1 + ReLU
    dec.append(make_deconv_s1_layer(w, b, pad=1, act="relu", bn_scale=1.0))
    for i, (ci, co) in enumerate([(256, 128), (128, 64), (64, 32)]):  # deconv_block
        w, b = _init_deconv(keys[6 + i], ci, co, 4)
        dec.append(make_deconv_subpixel_layer(w, b, act="relu", bn_scale=BN_SCALE))
    w, b = _init_deconv(keys[9], 32, out_channels, 4)           # final ConvT + Sigmoid
    dec.append(make_deconv_subpixel_layer(w, b, act="sigmoid", bn_scale=1.0))
    params["decoder"] = dec
    return params


def simple_vae_forward(params, x_ncdhw, eps_key):
    """x_ncdhw: (N, C, D, H, W).  Returns (recon, mu, logvar) in NCDHW."""
    lat = params["latent_channels"]
    h = jnp.transpose(x_ncdhw, (0, 2, 3, 4, 1))        # -> NDHWC

    for layer in params["encoder"]:
        h = conv3d_layer(h, layer)

    mu, logvar = h[..., :lat], h[..., lat:]
    std = jnp.exp(0.5 * logvar)
    eps = jax.random.normal(eps_key, std.shape, std.dtype)
    z = mu + eps * std

    d = z
    for layer in params["decoder"]:
        if layer["kind"] == "conv":
            d = conv3d_layer(d, layer)
        else:
            d = deconv_subpixel_layer(d, layer)

    to_ncdhw = lambda t: jnp.transpose(t, (0, 4, 1, 2, 3))
    return to_ncdhw(d), to_ncdhw(mu), to_ncdhw(logvar)


# ---------------------------------------------------------------------------
# Self-check: Pallas conv / sub-pixel deconv vs direct-definition references
# ---------------------------------------------------------------------------
def _reference_conv3d_ndhwc(x, w, b, stride, pad):
    xp = jnp.pad(x, ((0, 0), (pad, pad), (pad, pad), (pad, pad), (0, 0)))
    N, D, H, W, _ = xp.shape
    cout, cin, k, _, _ = w.shape
    Do, Ho, Wo = (D - k) // stride + 1, (H - k) // stride + 1, (W - k) // stride + 1
    out = jnp.zeros((N, Do, Ho, Wo, cout), jnp.float32)
    for td in range(k):
        for th in range(k):
            for tw in range(k):
                xs = xp[:, td:td + stride * Do:stride, th:th + stride * Ho:stride,
                        tw:tw + stride * Wo:stride, :]
                out = out + jnp.einsum('ndhwc,oc->ndhwo', xs, w[:, :, td, th, tw],
                                       precision=jax.lax.Precision.HIGHEST)
    return out + b


def _reference_conv_transpose3d_ndhwc(x, w_t, b, stride, pad):
    N, D, H, W, _ = x.shape
    cin, cout, k, _, _ = w_t.shape
    full = jnp.zeros((N, (D - 1) * stride + k, (H - 1) * stride + k,
                      (W - 1) * stride + k, cout), jnp.float32)
    for td in range(k):
        for th in range(k):
            for tw in range(k):
                c = jnp.einsum('ndhwc,co->ndhwo', x, w_t[:, :, td, th, tw],
                               precision=jax.lax.Precision.HIGHEST)
                full = full.at[:, td:td + stride * D:stride, th:th + stride * H:stride,
                               tw:tw + stride * W:stride, :].add(c)
    Do = (D - 1) * stride - 2 * pad + k
    Ho = (H - 1) * stride - 2 * pad + k
    Wo = (W - 1) * stride - 2 * pad + k
    return full[:, pad:pad + Do, pad:pad + Ho, pad:pad + Wo, :] + b


def _self_check():
    keys = jax.random.split(jax.random.PRNGKey(42), 6)
    q = lambda t: t.astype(jnp.bfloat16).astype(jnp.float32)  # match kernel's bf16 rounding

    # encoder-style Conv3d (k=3, s=2, p=1)
    x = jax.random.normal(keys[0], (2, 6, 6, 6, 5), jnp.float32) * 0.5
    w = jax.random.normal(keys[1], (7, 5, 3, 3, 3), jnp.float32) * 0.2
    b = jax.random.normal(keys[2], (7,), jnp.float32) * 0.2
    got = conv3d_layer(x, make_conv_layer(w, b, stride=2, pad=1, act="none", bn_scale=1.0))
    want = _reference_conv3d_ndhwc(q(x), q(w), b, stride=2, pad=1)
    np.testing.assert_allclose(np.asarray(got), np.asarray(want), rtol=2e-3, atol=2e-3)

    # decoder-style ConvTranspose3d (k=4, s=2, p=1) via sub-pixel decomposition
    xt = jax.random.normal(keys[3], (2, 3, 3, 3, 6), jnp.float32) * 0.5
    wt = jax.random.normal(keys[4], (6, 5, 4, 4, 4), jnp.float32) * 0.2
    bt = jax.random.normal(keys[5], (5,), jnp.float32) * 0.2
    got = deconv_subpixel_layer(xt, make_deconv_subpixel_layer(wt, bt, act="none", bn_scale=1.0))
    want = _reference_conv_transpose3d_ndhwc(q(xt), q(wt), bt, stride=2, pad=1)
    np.testing.assert_allclose(np.asarray(got), np.asarray(want), rtol=2e-3, atol=2e-3)


if __name__ == "__main__":
    _self_check()

    key = jax.random.PRNGKey(0)
    k_param, k_input, k_eps = jax.random.split(key, 3)

    params = init_params(k_param)
    # NCDHW input, spatial 16 (divisible by the 16x total down/up-sampling)
    x = jax.random.uniform(k_input, (1, 1, 16, 16, 16), jnp.float32)

    fwd = jax.jit(functools.partial(simple_vae_forward, params))
    recon, mu, logvar = fwd(x, k_eps)
    jax.block_until_ready((recon, mu, logvar))

    assert recon.shape == (1, 1, 16, 16, 16), recon.shape
    assert mu.shape == (1, 16, 1, 1, 1), mu.shape
    assert logvar.shape == (1, 16, 1, 1, 1), logvar.shape
    assert bool(jnp.all(jnp.isfinite(recon))), "non-finite recon"
    print("KERNEL_OK")
</pallas_src>

<mosaic_0001>
module attributes {stable_mosaic.version = 11 : i64} {
  func.func @_matmul_fused_kernel(%arg0: i32, %arg1: i32, %arg2: memref<56x135xbf16, #tpu.memory_space<vmem>>, %arg3: memref<135x128xbf16, #tpu.memory_space<vmem>>, %arg4: memref<1x128xf32, #tpu.memory_space<vmem>>, %arg5: memref<56x128xf32, #tpu.memory_space<vmem>>) attributes {dimension_semantics = [#tpu.dimension_semantics<parallel>, #tpu.dimension_semantics<parallel>], iteration_bounds = array<i64: 1, 1>, scalar_prefetch = 0 : i64, scratch_operands = 0 : i64, tpu.core_type = #tpu.core_type<tc>, window_params = [{transform_indices = @transform_0, window_bounds = array<i64: 56, 135>}, {transform_indices = @transform_1, window_bounds = array<i64: 135, 128>}, {transform_indices = @transform_2, window_bounds = array<i64: 1, 128>}, {transform_indices = @transform_3, window_bounds = array<i64: 56, 128>}]} {
    %c0 = arith.constant 0 : index
    %c0_0 = arith.constant 0 : index
    %0 = vector.load %arg2[%c0, %c0_0] : memref<56x135xbf16, #tpu.memory_space<vmem>>, vector<56x135xbf16>
    %c0_1 = arith.constant 0 : index
    %c0_2 = arith.constant 0 : index
    %1 = vector.load %arg3[%c0_1, %c0_2] : memref<135x128xbf16, #tpu.memory_space<vmem>>, vector<135x128xbf16>
    %cst = arith.constant dense<0.000000e+00> : vector<56x128xf32>
    %2 = tpu.matmul %0, %1, %cst {dimension_numbers = #tpu.dot_dimension_numbers<[1], [0], [0], [1], [0, 0, 1, 1], [], []>} : vector<56x135xbf16>, vector<135x128xbf16>, vector<56x128xf32> -> vector<56x128xf32>
    %c0_3 = arith.constant 0 : index
    %c0_4 = arith.constant 0 : index
    %3 = vector.load %arg4[%c0_3, %c0_4] : memref<1x128xf32, #tpu.memory_space<vmem>>, vector<1x128xf32>
    %4 = vector.broadcast %3 : vector<1x128xf32> to vector<56x128xf32>
    %5 = arith.addf %2, %4 : vector<56x128xf32>
    %c0_5 = arith.constant 0 : index
    %c0_6 = arith.constant 0 : index
    %6 = vector.load %arg5[%c0_5, %c0_6] : memref<56x128xf32, #tpu.memory_space<vmem>>, vector<56x128xf32>
    tpu.vector_store %arg5[%c0_5, %c0_6], %5 {strides = array<i32>} : memref<56x128xf32, #tpu.memory_space<vmem>>, vector<56x128xf32>,
    return
  }
  func.func @transform_0(%arg0: i32, %arg1: i32) -> (i32, i32) {
    %c0_i32 = arith.constant 0 : i32
    %c0_i32_0 = arith.constant 0 : i32
    return %arg0, %c0_i32 : i32, i32
  }
  func.func @transform_1(%arg0: i32, %arg1: i32) -> (i32, i32) {
    %c0_i32 = arith.constant 0 : i32
    %c0_i32_0 = arith.constant 0 : i32
    return %c0_i32, %arg1 : i32, i32
  }
  func.func @transform_2(%arg0: i32, %arg1: i32) -> (i32, i32) {
    %c0_i32 = arith.constant 0 : i32
    %c0_i32_0 = arith.constant 0 : i32
    return %c0_i32, %arg1 : i32, i32
  }
  func.func @transform_3(%arg0: i32, %arg1: i32) -> (i32, i32) {
    %c0_i32 = arith.constant 0 : i32
    return %arg0, %arg1 : i32, i32
  }
}

</mosaic_0001>

<bundles_post_ra>
// kernel: tpu_custom_call.1
= control target key start
LH: loop header
LB: loop body
LE: loop exit
PB: predicated region body
PF: predicated region fallthrough
CT: control target
= control target key end

     0   :  { %8 = vsyncpa [#allocation3], 0  ;;  %s487_s0 = inlined_call_operand.hbm [shape: bf16[56,135], index: 0, kind: input, shape index: {}]   ;;  %s488_s1 = inlined_call_operand.hbm [shape: bf16[135,128], index: 1, kind: input, shape index: {}]   ;;  %s489_s2 = inlined_call_operand.vmem [shape: f32[1,128], index: 2, kind: input, shape index: {}]   ;;  %s490_s3 = inlined_call_operand.hbm [shape: f32[56,128], index: 3, kind: output, shape index: {}]  }
   0x1   :  { %9 = vsyncpa [#allocation6], 0 }
   0x2   :  { %10 = vsyncpa [#allocation4], 0  ;;  %s409_s12 = smov [#allocation2]   ;;  %s337_s16 = scalar_lea.hbm %s487_s0, 896 }
   0x3   :  { %s16_s13 = sshll.u32 %s409_s12, 4  ;;  %p338_p0 = scmp.ne.s32.totalorder %s487_s0, %s337_s16  ;;  %s17_s13 = int_to_ptr.vmem [resolvable:$true] %s16_s13 }
   0x4   :  { %p341_p1 = scmp.lt.u32.totalorder %s337_s16, %s487_s0 }
   0x6   :  { %p343_p2 = pnand %p341_p1, %p338_p0 }
   0x8   :  { %346 = shalt.err (!%p343_p2)
}
   0x9   :  { %s347_s21 = scalar_lea.vmem %s17_s13, 896  ;;  %p352_p4 = scmp.lt.s32.totalorder %s17_s13, %s17_s13 }
   0xa   :  { %p348_p3 = scmp.ne.s32.totalorder %s17_s13, %s347_s21  ;;  %p353_p5 = scmp.lt.s32.totalorder %s347_s21, %s347_s21 }
   0xc   :  { %p354_p6 = por %p353_p5, %p352_p4 }
   0xe   :  { %p355_p7 = pnand %p354_p6, %p348_p3 }
  0x10   :  { %358 = shalt.err (!%p355_p7)
}
  0x11   :  { %s410_s22 = smov 128   ;;  %s411_s23 = smov 8  }
  0x12   :  { %22 = dma.hbm_to_vmem [thread:$0]  %s487_s0, 896, %s17_s13, [#allocation3], %s410_s22, %s410_s22, %s411_s23  }
  0x13   :  { %s412_s26 = smov [#allocation5]   ;;  %s359_s30 = scalar_lea.hbm %s488_s1, 1088 }
  0x14   :  { %s28_s27 = sshll.u32 %s412_s26, 4  ;;  %p360_p8 = scmp.ne.s32.totalorder %s488_s1, %s359_s30  ;;  %s29_s27 = int_to_ptr.vmem [resolvable:$true] %s28_s27 }
  0x15   :  { %p363_p9 = scmp.lt.u32.totalorder %s359_s30, %s488_s1 }
  0x17   :  { %p365_p10 = pnand %p363_p9, %p360_p8 }
  0x19   :  { %368 = shalt.err (!%p365_p10)
}
  0x1a   :  { %s369_s8 = scalar_lea.vmem %s29_s27, 1088  ;;  %p374_p12 = scmp.lt.s32.totalorder %s29_s27, %s29_s27 }
  0x1b   :  { %p370_p11 = scmp.ne.s32.totalorder %s29_s27, %s369_s8  ;;  %p375_p13 = scmp.lt.s32.totalorder %s369_s8, %s369_s8 }
  0x1d   :  { %p376_p0 = por %p375_p13, %p374_p12 }
  0x1f   :  { %p377_p1 = pnand %p376_p0, %p370_p11 }
  0x21   :  { %380 = shalt.err (!%p377_p1)
}
  0x22   :  { %s413_s0 = smov 64   ;;  %s414_s9 = smov 4  }
  0x23   :  { %34 = dma.hbm_to_vmem [thread:$0]  %s488_s1, 1088, %s29_s27, [#allocation6], %s413_s0, %s413_s0, %s414_s9  }
  0x24   :  { %403 = dma.done.wait [#allocation3], 896  }
  0x25   :  { %404 = vsyncadd [#allocation3], 4294966400 }
  0x26   :  { %405 = dma.done.wait [#allocation6], 1088  }
  0x27   :  { %406 = vsyncadd [#allocation6], 4294966208  ;;  %v415_v0 = vmov 0   ;;  %v317_v1 = vld [vmem:[#allocation5] sm:$0xff]   ;;  %v318_v2 = vld [vmem:[#allocation5 + $0x8] sm:$0xff]   ;;  %vm159_vm0 = vcmask 56320  }
  0x28   :  { %179 = vmatprep.subr.bf16.mxu0 %v415_v0  ;;  %290 = vmatprep.subr.bf16.mxu1 %v415_v0  ;;  %v319_v3 = vld [vmem:[#allocation5 + $0x10] sm:$0xff]   ;;  %v320_v5 = vld [vmem:[#allocation5 + $0x18] sm:$0xff]   ;;  %v321_v7 = vld [vmem:[#allocation5 + $0x20] sm:$0xff]   ;;  %vm172_vm1 = vcmask 1042432   ;;  %vm173_vm2 = vcmask 1043456   ;;  %v416_v10 = vmov 65535  }
  0x29   :  { %180 = vmatpush1.bf16.msra.mxu0 %v317_v1  ;;  %299 = vmatpush1.bf16.msra.mxu1 %v317_v1  ;;  %v328_v4 = vld [vmem:[#allocation2 + $0x4] ss:$8 sps:$4 sm:$0xff]   ;;  %v174_v11 = vsel %vm172_vm1, 4294967295, %v416_v10  ;;  %v324_v12 = vld [vmem:[#allocation5 + $0x38] sm:$0xff]   ;;  %v325_v13 = vld [vmem:[#allocation5 + $0x40] ss:$0 sps:$4 sm:$0xff]  }
  0x2a   :  { %181 = vmatprep.subr.bf16.mxu0 %v415_v0  ;;  %291 = vmatprep.subr.bf16.mxu1 %v415_v0  ;;  %v331_v6 = vld [vmem:[#allocation2 + $0x24] ss:$8 sps:$4 sm:$0xff]   ;;  %v175_v14 = vsel %vm173_vm2, %v174_v11, 0  ;;  %v50_v16 = vld [vmem:[#allocation2 + $0x30] sm:$0xff]  ;;  %v326_v17 = vld [vmem:[#allocation2] ss:$8 sps:$4 sm:$0xff]  }
  0x2b   :  { %286 = vmatprep.mubr.msk.bf16.mxu0 %vm159_vm0, %v328_v4  ;;  %288 = vmatprep.mubr.msk.bf16.mxu1 %vm159_vm0, %v331_v6  ;;  %v322_v8 = vld [vmem:[#allocation5 + $0x28] sm:$0xff]   ;;  %v323_v9 = vld [vmem:[#allocation5 + $0x30] sm:$0xff]   ;;  %v177_v15 = vand.u32 %v325_v13, %v175_v14  ;;  %v332_v19 = vld [vmem:[#allocation2 + $0x14] ss:$8 sps:$4 sm:$0xff]   ;;  %v276_v20 = vcombine.high %v50_v16, %v50_v16  ;;  %v275_v22 = vcombine.low %v50_v16, %v50_v16  ;;  %s417_s13 = smov [#allocation7]  }
  0x2c   :  { %v329_v18 = vld [vmem:[#allocation2 + $0x20] ss:$8 sps:$4 sm:$0xff]   ;;  %v335_v21 = vld [vmem:[#allocation2 + $0x10] ss:$8 sps:$4 sm:$0xff]  }
  0x2d   :  { %182 = vmatpush1.bf16.msra.mxu0 %v318_v2  ;;  %300 = vmatpush1.bf16.msra.mxu1 %v318_v2  ;;  %v268_v23 = vld [vmem:[%s489_s2] ss:$0 sm:$0xff]  ;;  %s255_s2 = sshll.u32 %s417_s13, 4  ;;  %s256_s2 = int_to_ptr.vmem [resolvable:$true] %s255_s2 }
  0x2e   :  { %183 = vmatprep.subr.bf16.mxu0 %v415_v0  ;;  %292 = vmatprep.subr.bf16.mxu1 %v415_v0  ;;  %s381_s14 = scalar_lea.vmem %s256_s2, 896  ;;  %p386_p3 = scmp.lt.s32.totalorder %s256_s2, %s256_s2 }
  0x2f   :  { %p382_p2 = scmp.ne.s32.totalorder %s256_s2, %s381_s14  ;;  %p387_p4 = scmp.lt.s32.totalorder %s381_s14, %s381_s14 }
  0x31   :  { %184 = vmatpush1.bf16.msra.mxu0 %v319_v3  ;;  %301 = vmatpush1.bf16.msra.mxu1 %v319_v3  ;;  %p388_p5 = por %p387_p4, %p386_p3 }
  0x32   :  { %185 = vmatprep.subr.bf16.mxu0 %v415_v0  ;;  %293 = vmatprep.subr.bf16.mxu1 %v415_v0 }
  0x33   :  { %p389_p6 = pnand %p388_p5, %p382_p2 }
  0x35   :  { %186 = vmatpush1.bf16.msra.mxu0 %v320_v5  ;;  %302 = vmatpush1.bf16.msra.mxu1 %v320_v5 }
  0x36   :  { %187 = vmatprep.subr.bf16.mxu0 %v415_v0  ;;  %294 = vmatprep.subr.bf16.mxu1 %v415_v0 }
  0x39   :  { %188 = vmatpush1.bf16.msra.mxu0 %v321_v7  ;;  %303 = vmatpush1.bf16.msra.mxu1 %v321_v7 }
  0x3a   :  { %189 = vmatprep.subr.bf16.mxu0 %v415_v0  ;;  %295 = vmatprep.subr.bf16.mxu1 %v415_v0 }
  0x3d   :  { %190 = vmatpush1.bf16.msra.mxu0 %v322_v8  ;;  %304 = vmatpush1.bf16.msra.mxu1 %v322_v8 }
  0x3e   :  { %191 = vmatprep.subr.bf16.mxu0 %v415_v0  ;;  %296 = vmatprep.subr.bf16.mxu1 %v415_v0 }
  0x41   :  { %192 = vmatpush1.bf16.msra.mxu0 %v323_v9  ;;  %305 = vmatpush1.bf16.msra.mxu1 %v323_v9 }
  0x42   :  { %193 = vmatprep.subr.bf16.mxu0 %v415_v0  ;;  %297 = vmatprep.subr.bf16.mxu1 %v415_v0 }
  0x45   :  { %194 = vmatpush1.bf16.msra.mxu0 %v324_v12  ;;  %306 = vmatpush1.bf16.msra.mxu1 %v324_v12 }
  0x46   :  { %195 = vmatprep.subr.bf16.mxu0 %v415_v0  ;;  %298 = vmatprep.subr.bf16.mxu1 %v415_v0 }
  0x49   :  { %196 = vmatpush1.bf16.msra.mxu0 %v177_v15  ;;  %307 = vmatpush1.bf16.msra.mxu1 %v177_v15 }
  0x4c   :  { %212 = vmatmul.mubr.bf16.vlgmr.msra.gmra.mrb[0].mxu0 %v326_v17  ;;  %228 = vmatmul.mubr.bf16.vlgmr.msra.gmra.mrb[0].mxu1 %v329_v18 }
  0x4d   :  { %287 = vmatprep.mubr.msk.bf16.mxu0 %vm159_vm0, %v332_v19  ;;  %289 = vmatprep.mubr.msk.bf16.mxu1 %vm159_vm0, %v276_v20 }
  0x54   :  { %220 = vmatmul.mubr.bf16.gmra.mrb[4].mxu0 %v335_v21  ;;  %236 = vmatmul.mubr.bf16.gmra.mrb[4].mxu1 %v275_v22 }
 0x11f   :  { %v213_v24 = vpop.f32.mrb[0].mxu0  ;;  %v229_v25 = vpop.f32.mrb[0].mxu1 }
 0x120   :  { %v214_v26 = vadd.f32 %v268_v23, %v213_v24  ;;  %v230_v27 = vadd.f32 %v268_v23, %v229_v25  ;;  %v215_v28 = vpop.f32.mrb[1].mxu0  ;;  %v231_v29 = vpop.f32.mrb[1].mxu1 }
 0x121   :  { %v216_v30 = vpop.f32.mrb[2].mxu0  ;;  %v232_v31 = vpop.f32.mrb[2].mxu1 }
 0x122   :  { %243 = vst [vmem:[#allocation7] sm:$0xff] %v214_v26  ;;  %247 = vst [vmem:[#allocation7 + $0x20] sm:$0xff] %v230_v27  ;;  %v217_v32 = vadd.f32 %v268_v23, %v216_v30  ;;  %v233_v33 = vadd.f32 %v268_v23, %v232_v31  ;;  %v218_v34 = vpop.f32.mrb[3].mxu0  ;;  %v234_v35 = vpop.f32.mrb[3].mxu1 }
 0x124   :  { %244 = vst [vmem:[#allocation7 + $0x8] sm:$0xff] %v217_v32  ;;  %248 = vst [vmem:[#allocation7 + $0x28] sm:$0xff] %v233_v33 }
 0x127   :  { %v221_v36 = vpop.f32.mrb[4].mxu0  ;;  %v237_v37 = vpop.f32.mrb[4].mxu1 }
 0x128   :  { %v222_v38 = vadd.f32 %v268_v23, %v221_v36  ;;  %v238_v39 = vadd.f32 %v268_v23, %v237_v37  ;;  %v223_v40 = vpop.f32.mrb[5].mxu0  ;;  %v239_v41 = vpop.f32.mrb[5].mxu1 }
 0x129   :  { %v224_v42 = vpop.f32.mrb[6].mxu0  ;;  %v240_v43 = vpop.f32.mrb[6].mxu1 }
 0x12a   :  { %245 = vst [vmem:[#allocation7 + $0x10] sm:$0xff] %v222_v38  ;;  %249 = vst [vmem:[#allocation7 + $0x30] sm:$0xff] %v238_v39  ;;  %v225_v44 = vadd.f32 %v268_v23, %v224_v42  ;;  %v226_v45 = vpop.f32.mrb[7].mxu0  ;;  %v241_v46 = vpop.f32.mrb[7].mxu1 }
 0x12c   :  { %246 = vst [vmem:[#allocation7 + $0x18] sm:$0xff] %v225_v44 }
 0x12d   :  { %392 = shalt.err (!%p389_p6)
}
 0x12e   :  { %s393_s17 = scalar_lea.hbm %s490_s3, 896 }
 0x12f   :  { %p394_p7 = scmp.ne.s32.totalorder %s490_s3, %s393_s17  ;;  %p397_p8 = scmp.lt.u32.totalorder %s393_s17, %s490_s3 }
 0x131   :  { %p399_p9 = pnand %p397_p8, %p394_p7 }
 0x133   :  { %402 = shalt.err (!%p399_p9)
}
 0x134   :  { %261 = dma.vmem_to_hbm [thread:$0]  %s256_s2, 896, %s490_s3, [#allocation4], %s410_s22, %s410_s22, %s411_s23  }
 0x135   :  { %407 = dma.done.wait [#allocation4], 896  }
 0x136   :  { %408 = vsyncadd [#allocation4], 4294966400 }
 0x137   :  { %265 = vsyncpa [#allocation3], 1 }
 0x138   :  { %266 = vsyncpa [#allocation6], 1 }
 0x139   :  { %267 = vsyncpa [#allocation4], 1 }

</bundles_post_ra>
